<compile_context>
chip_gen: v7x
topology: tpu7x:2x2x1
jax: 0.10.0
libtpu: 0.0.40
codegen_flags: <defaults>
</compile_context>

<pallas_src>
import jax
import jax.numpy as jnp
from jax.experimental import pallas as pl
from jax.experimental.pallas import tpu as pltpu

_MAX_TB = 128  # max labels per grid step -> (TB, H) dense f32 output slab


def _embed_kernel(labels_ref, table_hbm, out_ref, table_vmem, load_sem):
    # labels_ref: VMEM int32 [TB, 1]        (one block of labels)
    # table_hbm : HBM  [V_pad, H]           (memory_space=pl.ANY, no auto-DMA)
    # out_ref   : VMEM [TB, H]              (dense output block)
    # table_vmem: VMEM [V_pad, H] scratch   (single-buffered resident table)
    # load_sem  : DMA semaphore

    # One-time residency: copy the whole table HBM -> VMEM at the first step.
    # Grid axis is "arbitrary" (sequential), so the scratch persists and stays
    # valid for all later steps.
    @pl.when(pl.program_id(0) == 0)
    def _load_table():
        cp = pltpu.make_async_copy(table_hbm, table_vmem, load_sem)
        cp.start()
        cp.wait()

    labels = labels_ref[...]                       # (TB, 1) int32
    tb = labels.shape[0]
    v_pad = table_vmem.shape[0]

    # Vectorized one-hot on the VPU, gather on the MXU.
    col_ids = jax.lax.broadcasted_iota(jnp.int32, (tb, v_pad), 1)
    one_hot = (col_ids == labels).astype(table_vmem.dtype)        # (TB, V_pad)
    out_ref[...] = jnp.dot(
        one_hot, table_vmem[...], preferred_element_type=jnp.float32
    ).astype(out_ref.dtype)


def embedding_lookup(labels, table):
    """Gather rows of `table` at `labels` with a Pallas kernel.

    labels: int [B];  table: [V, H]  ->  [B, H]
    """
    B = labels.shape[0]
    V, H = table.shape
    dtype = table.dtype
    itemsize = jnp.dtype(dtype).itemsize

    # Safety: clamp so a bad label can never select a row out of range.
    labels = jnp.clip(labels.astype(jnp.int32), 0, V - 1)

    # MXU / lane alignment: pad the contraction (vocab) dim to a multiple of
    # 128. Padded rows are zero and are never selected (labels < V).
    V_pad = pl.cdiv(V, 128) * 128
    if V_pad != V:
        table = jnp.pad(table, ((0, V_pad - V), (0, 0)))

    # Batch block: multiple of 8 (sublane), capped at _MAX_TB. Pad batch so
    # every output store is a full dense (TB, H) tile.
    TB = min(_MAX_TB, pl.cdiv(B, 8) * 8)
    B_pad = pl.cdiv(B, TB) * TB
    if B_pad != B:
        labels = jnp.pad(labels, (0, B_pad - B))   # pad value 0 is a valid row
    labels2d = labels.reshape(B_pad, 1)

    # Explicit VMEM budget: single-buffered table + double-buffered label/out
    # blocks + headroom. (Cast the table to bf16 here if HBM bandwidth / VMEM
    # footprint matters more than exact f32 rows.)
    table_bytes = V_pad * H * itemsize
    out_block_bytes = TB * H * itemsize
    vmem_limit = int(table_bytes + 2 * out_block_bytes + 2 * TB * 4 + (4 << 20))

    grid_spec = pltpu.PrefetchScalarGridSpec(
        num_scalar_prefetch=0,
        grid=(B_pad // TB,),
        in_specs=[
            pl.BlockSpec((TB, 1), lambda i: (i, 0)),   # labels block -> VMEM
            pl.BlockSpec(memory_space=pl.ANY),         # table stays in HBM
        ],
        out_specs=pl.BlockSpec((TB, H), lambda i: (i, 0)),
        scratch_shapes=[
            pltpu.VMEM((V_pad, H), dtype),             # resident table (1 copy)
            pltpu.SemaphoreType.DMA(()),
        ],
    )

    out = pl.pallas_call(
        _embed_kernel,
        out_shape=jax.ShapeDtypeStruct((B_pad, H), dtype),
        grid_spec=grid_spec,
        compiler_params=pltpu.CompilerParams(
            # Sequential: required so the step-0 table load covers all steps,
            # and avoids duplicating the dominant table DMA across v7x cores.
            dimension_semantics=("arbitrary",),
            vmem_limit_bytes=vmem_limit,
        ),
    )(labels2d, table)

    return out[:B] if B_pad != B else out


class LabelEmbedder:
    """JAX/Pallas port of the PyTorch LabelEmbedder."""

    def __init__(self, num_classes, hidden_size, dropout_prob, *, param_key):
        use_cfg_embedding = int(dropout_prob > 0)
        # nn.Embedding default init ~ N(0, 1); deterministic synthetic params.
        self.embedding_table = jax.random.normal(
            param_key, (num_classes + use_cfg_embedding, hidden_size), dtype=jnp.float32
        )
        self.num_classes = num_classes
        self.dropout_prob = dropout_prob

    def token_drop(self, labels, drop_key, force_drop_ids=None):
        if force_drop_ids is None:
            if drop_key is None:
                raise ValueError("drop_key is required for random label dropout")
            drop_ids = jax.random.uniform(drop_key, (labels.shape[0],)) < self.dropout_prob
        else:
            drop_ids = force_drop_ids == 1
        labels = jnp.where(drop_ids, self.num_classes, labels)
        return labels

    def __call__(self, labels, train, drop_key=None, force_drop_ids=None):
        use_dropout = self.dropout_prob > 0
        if (train and use_dropout) or (force_drop_ids is not None):
            labels = self.token_drop(labels, drop_key, force_drop_ids)
        embeddings = embedding_lookup(labels, self.embedding_table)
        return embeddings


if __name__ == "__main__":
    key = jax.random.PRNGKey(0)
    k_param, k_labels, k_drop = jax.random.split(key, 3)

    num_classes = 10
    hidden_size = 128
    dropout_prob = 0.1
    batch = 8

    embedder = LabelEmbedder(num_classes, hidden_size, dropout_prob, param_key=k_param)

    labels = jax.random.randint(k_labels, (batch,), 0, num_classes, dtype=jnp.int32)
    force_drop_ids = jnp.array([0, 1, 0, 0, 1, 0, 0, 0], dtype=jnp.int32)

    # Forward with forced drops (deterministic), matching PyTorch semantics.
    out = embedder(labels, train=True, drop_key=k_drop, force_drop_ids=force_drop_ids)
    out = jax.block_until_ready(out)

    # Reference: plain-JAX gather with the same dropped labels. Tolerance is
    # loose enough for any MXU matmul precision path, tight enough to catch a
    # wrong-row gather (errors would be O(1) on N(0,1) values).
    dropped = jnp.where(force_drop_ids == 1, num_classes, labels)
    ref = jnp.take(embedder.embedding_table, dropped, axis=0)
    assert out.shape == (batch, hidden_size)
    assert jnp.allclose(out, ref, rtol=1e-2, atol=1e-5), "Pallas embedding lookup mismatch"

    # Eval-mode path (no dropout).
    out_eval = jax.block_until_ready(embedder(labels, train=False))
    ref_eval = jnp.take(embedder.embedding_table, labels, axis=0)
    assert jnp.allclose(out_eval, ref_eval, rtol=1e-2, atol=1e-5)

    # Non-multiple-of-8 batch exercises the padding path.
    labels_odd = labels[:5]
    out_odd = jax.block_until_ready(embedder(labels_odd, train=False))
    ref_odd = jnp.take(embedder.embedding_table, labels_odd, axis=0)
    assert out_odd.shape == (5, hidden_size)
    assert jnp.allclose(out_odd, ref_odd, rtol=1e-2, atol=1e-5)

    print("KERNEL_OK")
</pallas_src>

<mosaic_0001>
module attributes {stable_mosaic.version = 11 : i64} {
  func.func @_embed_kernel(%arg0: i32, %arg1: memref<8x1xi32, #tpu.memory_space<vmem>>, %arg2: memref<128x128xf32, #tpu.memory_space<any>>, %arg3: memref<8x128xf32, #tpu.memory_space<vmem>>, %arg4: memref<128x128xf32, #tpu.memory_space<vmem>>, %arg5: memref<!tpu.dma_semaphore, #tpu.memory_space<semaphore_mem>>) attributes {dimension_semantics = [#tpu.dimension_semantics<arbitrary>], iteration_bounds = array<i64: 1>, scalar_prefetch = 0 : i64, scratch_operands = 2 : i64, tpu.core_type = #tpu.core_type<tc>, window_params = [{transform_indices = @transform_0, window_bounds = array<i64: 8, 1>}, {}, {transform_indices = @transform_2, window_bounds = array<i64: 8, 128>}]} {
    %c0_i32 = arith.constant 0 : i32
    %0 = arith.cmpi eq, %arg0, %c0_i32 : i32
    %1 = arith.extui %0 : i1 to i32
    %c0_i32_0 = arith.constant 0 : i32
    %2 = arith.cmpi ne, %1, %c0_i32_0 : i32
    scf.if %2 {
      tpu.enqueue_dma source(%arg2 : memref<128x128xf32, #tpu.memory_space<any>>) target(%arg4 : memref<128x128xf32, #tpu.memory_space<vmem>>) target_semaphore(%arg5 : memref<!tpu.dma_semaphore, #tpu.memory_space<semaphore_mem>>)
      tpu.wait_dma2 semaphore(%arg5 : memref<!tpu.dma_semaphore, #tpu.memory_space<semaphore_mem>>) src(%arg2 : memref<128x128xf32, #tpu.memory_space<any>>) dst(%arg4 : memref<128x128xf32, #tpu.memory_space<vmem>>)
    } else {
    }
    %c0 = arith.constant 0 : index
    %c0_1 = arith.constant 0 : index
    %3 = vector.load %arg1[%c0, %c0_1] : memref<8x1xi32, #tpu.memory_space<vmem>>, vector<8x1xi32>
    %4 = tpu.iota {dimensions = array<i32: 1>} : vector<8x128xi32>
    %5 = vector.broadcast %3 : vector<8x1xi32> to vector<8x128xi32>
    %6 = arith.cmpi eq, %4, %5 : vector<8x128xi32>
    %7 = arith.extui %6 : vector<8x128xi1> to vector<8x128xi32>
    %8 = arith.sitofp %7 : vector<8x128xi32> to vector<8x128xf32>
    %c0_2 = arith.constant 0 : index
    %c0_3 = arith.constant 0 : index
    %9 = vector.load %arg4[%c0_2, %c0_3] : memref<128x128xf32, #tpu.memory_space<vmem>>, vector<128x128xf32>
    %cst = arith.constant dense<0.000000e+00> : vector<8x128xf32>
    %10 = tpu.matmul %8, %9, %cst {dimension_numbers = #tpu.dot_dimension_numbers<[1], [0], [0], [1], [0, 0, 1, 1], [], []>} : vector<8x128xf32>, vector<128x128xf32>, vector<8x128xf32> -> vector<8x128xf32>
    %c0_4 = arith.constant 0 : index
    %c0_5 = arith.constant 0 : index
    %11 = vector.load %arg3[%c0_4, %c0_5] : memref<8x128xf32, #tpu.memory_space<vmem>>, vector<8x128xf32>
    tpu.vector_store %arg3[%c0_4, %c0_5], %10 {strides = array<i32>} : memref<8x128xf32, #tpu.memory_space<vmem>>, vector<8x128xf32>,
    return
  }
  func.func @transform_0(%arg0: i32) -> (i32, i32) {
    %c0_i32 = arith.constant 0 : i32
    %c0_i32_0 = arith.constant 0 : i32
    return %arg0, %c0_i32 : i32, i32
  }
  func.func @transform_2(%arg0: i32) -> (i32, i32) {
    %c0_i32 = arith.constant 0 : i32
    %c0_i32_0 = arith.constant 0 : i32
    return %arg0, %c0_i32 : i32, i32
  }
}

</mosaic_0001>

<bundles_post_ra>
// kernel: tpu_custom_call.1
= control target key start
LH: loop header
LB: loop body
LE: loop exit
PB: predicated region body
PF: predicated region fallthrough
CT: control target
= control target key end

     0   :  { %7 = vsyncpa [#allocation5], 0  ;;  %s279_s9 = smov [#allocation2]   ;;  %s328_s0 = inlined_call_operand.vmem [shape: s32[8,1], index: 0, kind: input, shape index: {}]   ;;  %s329_s1 = inlined_call_operand.hbm [shape: f32[128,128], index: 1, kind: input, shape index: {}]   ;;  %s330_s2 = inlined_call_operand.hbm [shape: f32[8,128], index: 2, kind: output, shape index: {}]  }
   0x1   :  { %s21_s10 = sshll.u32 %s279_s9, 4  ;;  %s231_s13 = scalar_lea.hbm %s329_s1, 2048  ;;  %s22_s10 = int_to_ptr.vmem [resolvable:$true] %s21_s10 }
   0x2   :  { %p232_p0 = scmp.ne.s32.totalorder %s329_s1, %s231_s13  ;;  %p235_p1 = scmp.lt.u32.totalorder %s231_s13, %s329_s1 }
   0x4   :  { %p237_p2 = pnand %p235_p1, %p232_p0 }
   0x6   :  { %240 = shalt.err (!%p237_p2)  }
   0x7   :  { %s241_s18 = scalar_lea.vmem %s22_s10, 2048  ;;  %p246_p4 = scmp.lt.s32.totalorder %s22_s10, %s22_s10 }
   0x8   :  { %p242_p3 = scmp.ne.s32.totalorder %s22_s10, %s241_s18  ;;  %p247_p5 = scmp.lt.s32.totalorder %s241_s18, %s241_s18 }
   0xa   :  { %p248_p6 = por %p247_p5, %p246_p4 }
   0xc   :  { %p249_p7 = pnand %p248_p6, %p242_p3 }
   0xe   :  { %252 = shalt.err (!%p249_p7)  }
   0xf   :  { %24 = dma.hbm_to_vmem [thread:$0]  %s329_s1, 2048, %s22_s10, [#allocation3] }
  0x10   :  { %275 = dma.done.wait [#allocation3], 2048 }
  0x11   :  { %276 = vsyncadd [#allocation3], 4294965248  ;;  %v280_v0 = vmov 0   ;;  %v281_v1 = vmov 0.0|0.0   ;;  %v28_v2 = vld [vmem:[%s328_s0] sm:$0xff]  ;;  %v38_v4 = vld [vmem:[#allocation2 + $0x8] sm:$0xff]  ;;  %v29_v28 = vlaneseq }
  0x12   :  { %230 = vset.pattern.permute.xlu0 %v280_v0  ;;  %199 = vmatprep.subr.bf16.mxu0 %v281_v1  ;;  %v37_v3 = vld [vmem:[#allocation2] sm:$0xff]  ;;  %v39_v6 = vld [vmem:[#allocation2 + $0x10] sm:$0xff]  ;;  %v40_v7 = vld [vmem:[#allocation2 + $0x18] sm:$0xff]  ;;  %vm282_vm0 = vmmov 0   ;;  %v283_v8 = vmov 0.0   ;;  %v284_v31 = vmov 1.0  }
  0x13   :  { %32 = vperm.xlu0 %230, %v28_v2   ;;  %v200_v5 = vpack.c.bf16 %v38_v4, %v37_v3  ;;  %196 = vmatprep.mubr.msk.f32.mxu0 %vm282_vm0, %v283_v8  ;;  %v203_v9 = vpack.c.bf16 %v40_v7, %v39_v6  ;;  %v41_v10 = vld [vmem:[#allocation2 + $0x20] sm:$0xff]  ;;  %v42_v11 = vld [vmem:[#allocation2 + $0x28] sm:$0xff]  ;;  %v43_v13 = vld [vmem:[#allocation2 + $0x30] sm:$0xff]  ;;  %v30_v29 = vand.u32 127, %v29_v28  ;;  %s285_s0 = smov [#allocation4]  }
  0x14   :  { %v206_v12 = vpack.c.bf16 %v42_v11, %v41_v10  ;;  %v44_v14 = vld [vmem:[#allocation2 + $0x38] sm:$0xff]  ;;  %v45_v16 = vld [vmem:[#allocation2 + $0x40] sm:$0xff]  ;;  %v46_v17 = vld [vmem:[#allocation2 + $0x48] sm:$0xff]  ;;  %s130_s1 = sshll.u32 %s285_s0, 4  ;;  %s131_s1 = int_to_ptr.vmem [resolvable:$true] %s130_s1 }
  0x15   :  { %201 = vmatpush3.bf16.msra.mxu0 %v200_v5  ;;  %v209_v15 = vpack.c.bf16 %v44_v14, %v43_v13  ;;  %v212_v18 = vpack.c.bf16 %v46_v17, %v45_v16  ;;  %v47_v19 = vld [vmem:[#allocation2 + $0x50] sm:$0xff]  ;;  %v48_v20 = vld [vmem:[#allocation2 + $0x58] sm:$0xff]  ;;  %v49_v22 = vld [vmem:[#allocation2 + $0x60] sm:$0xff]  ;;  %s253_s23 = scalar_lea.vmem %s131_s1, 128  ;;  %p258_p9 = scmp.lt.s32.totalorder %s131_s1, %s131_s1 }
  0x16   :  { %202 = vmatprep.subr.bf16.mxu0 %v281_v1  ;;  %v215_v21 = vpack.c.bf16 %v48_v20, %v47_v19  ;;  %v50_v23 = vld [vmem:[#allocation2 + $0x68] sm:$0xff]  ;;  %v51_v25 = vld [vmem:[#allocation2 + $0x70] sm:$0xff]  ;;  %v52_v26 = vld [vmem:[#allocation2 + $0x78] sm:$0xff]  ;;  %p254_p8 = scmp.ne.s32.totalorder %s131_s1, %s253_s23  ;;  %p259_p10 = scmp.lt.s32.totalorder %s253_s23, %s253_s23 }
  0x17   :  { %v218_v24 = vpack.c.bf16 %v50_v23, %v49_v22  ;;  %v221_v27 = vpack.c.bf16 %v52_v26, %v51_v25 }
  0x18   :  { %p260_p11 = por %p259_p10, %p258_p9 }
  0x19   :  { %204 = vmatpush3.bf16.msra.mxu0 %v203_v9 }
  0x1a   :  { %205 = vmatprep.subr.bf16.mxu0 %v281_v1  ;;  %p261_p12 = pnand %p260_p11, %p254_p8 }
  0x1d   :  { %207 = vmatpush3.bf16.msra.mxu0 %v206_v12 }
  0x1e   :  { %208 = vmatprep.subr.bf16.mxu0 %v281_v1 }
  0x21   :  { %210 = vmatpush3.bf16.msra.mxu0 %v209_v15 }
  0x22   :  { %211 = vmatprep.subr.bf16.mxu0 %v281_v1 }
  0x25   :  { %213 = vmatpush3.bf16.msra.mxu0 %v212_v18 }
  0x26   :  { %214 = vmatprep.subr.bf16.mxu0 %v281_v1 }
  0x29   :  { %216 = vmatpush3.bf16.msra.mxu0 %v215_v21 }
  0x2a   :  { %217 = vmatprep.subr.bf16.mxu0 %v281_v1 }
  0x2d   :  { %219 = vmatpush3.bf16.msra.mxu0 %v218_v24 }
  0x2e   :  { %220 = vmatprep.subr.bf16.mxu0 %v281_v1 }
  0x31   :  { %222 = vmatpush3.bf16.msra.mxu0 %v221_v27 }
  0x92   :  { %v33_v30 = vpop.permute.xlu0 %32 }
  0x93   :  { %vm34_vm1 = vcmp.eq.s32.totalorder %v30_v29, %v33_v30 }
  0x94   :  { %197 = vmatmul.mubr.msk.f32.vlgmr.msra.gmra.mrb[0].mxu0 %vm34_vm1, %v284_v31 }
 0x167   :  { %v119_v32 = vpop.f32.mrb[0].mxu0 }
 0x168   :  { %123 = vst [vmem:[#allocation4] sm:$0xff] %v119_v32  ;;  %v198_v33 = vpop.f32.mrb[1].mxu0 }
 0x169   :  { %264 = shalt.err (!%p261_p12)
}
 0x16a   :  { %s265_s26 = scalar_lea.hbm %s330_s2, 128 }
 0x16b   :  { %p266_p13 = scmp.ne.s32.totalorder %s330_s2, %s265_s26  ;;  %p269_p0 = scmp.lt.u32.totalorder %s265_s26, %s330_s2 }
 0x16d   :  { %p271_p1 = pnand %p269_p0, %p266_p13 }
 0x16f   :  { %274 = shalt.err (!%p271_p1)
}
 0x170   :  { %133 = dma.vmem_to_hbm [thread:$0]  %s131_s1, 128, %s330_s2, [#allocation5]  }
 0x171   :  { %277 = dma.done.wait [#allocation5], 128  }
 0x172   :  { %278 = vsyncadd [#allocation5], 4294967168 }
 0x173   :  { %137 = vsyncpa [#allocation5], 1 }
 0x174   :  { %138 = vsyncmov [#allocation3] }
 0x177   :  { %s139_s5 = vpop.sfrf %138 }
 0x178   :  { %p146_p2 = scmp.ne.s32.totalorder %s139_s5, 0 }
 0x17a   :  { %143 = shalt.err (%p146_p2)  }

</bundles_post_ra>
